<compile_context>
chip_gen: v7x
topology: tpu7x:2x2x1
jax: 0.10.0
libtpu: 0.0.40
codegen_flags: <defaults>
</compile_context>

<pallas_src>
import functools
import math

import jax
import jax.numpy as jnp
from jax.experimental import pallas as pl
from jax.experimental.pallas import tpu as pltpu

# ----- config (synthetic, matches the module's use of config['nrPoints']) ----
NR_POINTS = 64
IN_FEATURES = 32

H1 = int(NR_POINTS * 2 / 4)   # 32
H2 = int(NR_POINTS * 2 / 2)   # 64
H3 = int(NR_POINTS * 2)       # 128

LANES = 128


def _round_up(n, m):
    return ((n + m - 1) // m) * m


H1P = _round_up(H1, LANES)    # 128
H2P = _round_up(H2, LANES)    # 128
H3P = _round_up(H3, LANES)    # 128
assert H1P == H2P == H3P == LANES, "padding below assumes 128-lane hidden dims"

TILE_B = 128                  # batch rows per grid step (multiple of 8 sublanes)


def _decoder_kernel(x_ref, w1_ref, w2_ref, w3_ref, b_ref, o_ref):
    # layer 1 + ReLU  (bf16 operands, f32 accumulation on the MXU)
    h = jnp.dot(x_ref[...], w1_ref[...], preferred_element_type=jnp.float32)
    h = jnp.maximum(h + b_ref[0:1, :], 0.0).astype(jnp.bfloat16)
    # layer 2 + ReLU
    h = jnp.dot(h, w2_ref[...], preferred_element_type=jnp.float32)
    h = jnp.maximum(h + b_ref[1:2, :], 0.0).astype(jnp.bfloat16)
    # layer 3 (no activation) — single fused lane-dense store
    y = jnp.dot(h, w3_ref[...], preferred_element_type=jnp.float32)
    o_ref[...] = (y + b_ref[2:3, :]).astype(o_ref.dtype)


@functools.partial(jax.jit, static_argnames=("tile_b",))
def gcn_decoder(x, packed_params, *, tile_b=TILE_B):
    """x: (IN_FEATURES,) or (B, IN_FEATURES) f32 latents.

    Returns (NR_POINTS, 2) for a single latent, (B, NR_POINTS, 2) for a batch.
    """
    w1, w2, w3, b = packed_params
    single = (x.ndim == 1)
    xb = x[None, :] if single else x
    B = xb.shape[0]
    Bp = _round_up(max(B, 1), tile_b)
    if Bp != B:
        xb = jnp.pad(xb, ((0, Bp - B), (0, 0)))
    xb = xb.astype(jnp.bfloat16)

    y = pl.pallas_call(
        _decoder_kernel,
        out_shape=jax.ShapeDtypeStruct((Bp, H3P), jnp.float32),
        grid=(Bp // tile_b,),
        in_specs=[
            pl.BlockSpec((tile_b, IN_FEATURES), lambda i: (i, 0)),  # x tile
            pl.BlockSpec((IN_FEATURES, H1P), lambda i: (0, 0)),     # W1 (resident)
            pl.BlockSpec((H1P, H2P), lambda i: (0, 0)),             # W2 (resident)
            pl.BlockSpec((H2P, H3P), lambda i: (0, 0)),             # W3 (resident)
            pl.BlockSpec((3, LANES), lambda i: (0, 0)),             # packed biases
        ],
        out_specs=pl.BlockSpec((tile_b, H3P), lambda i: (i, 0)),
        compiler_params=pltpu.CompilerParams(
            dimension_semantics=("parallel",)),
    )(xb, w1, w2, w3, b)

    y = y[:B, :H3]
    out = y.reshape(B, NR_POINTS, 2)          # torch: unflatten(0,(nrPoints,2))
    return out[0] if single else out


def init_params(key):
    """Torch nn.Linear-style init (uniform +/- 1/sqrt(fan_in)).

    Weights are stored pre-transposed as (in, out); biases as (out,)."""
    ks = jax.random.split(key, 6)

    def lin(kw, kb, fan_in, fan_out):
        bound = 1.0 / math.sqrt(fan_in)
        w = jax.random.uniform(kw, (fan_in, fan_out), jnp.float32, -bound, bound)
        b = jax.random.uniform(kb, (fan_out,), jnp.float32, -bound, bound)
        return w, b

    w1, b1 = lin(ks[0], ks[1], IN_FEATURES, H1)
    w2, b2 = lin(ks[2], ks[3], H1, H2)
    w3, b3 = lin(ks[4], ks[5], H2, H3)
    return (w1, b1, w2, b2, w3, b3)


def pack_params(params):
    """Zero-pad hidden dims to 128 lanes, cast weights to bf16, and pack the
    three biases into one (3, 128) f32 array.

    Zero padding keeps the math exact: ReLU(0)=0 and zero weight rows/columns
    contribute nothing to the next matmul."""
    w1, b1, w2, b2, w3, b3 = params
    w1p = jnp.zeros((IN_FEATURES, H1P), jnp.float32).at[:, :H1].set(w1)
    w2p = jnp.zeros((H1P, H2P), jnp.float32).at[:H1, :H2].set(w2)
    w3p = jnp.zeros((H2P, H3P), jnp.float32).at[:H2, :H3].set(w3)
    b = jnp.zeros((3, LANES), jnp.float32)
    b = b.at[0, :H1].set(b1).at[1, :H2].set(b2).at[2, :H3].set(b3)
    return (w1p.astype(jnp.bfloat16), w2p.astype(jnp.bfloat16),
            w3p.astype(jnp.bfloat16), b)


if __name__ == "__main__":
    key = jax.random.PRNGKey(0)
    k_x, k_p = jax.random.split(key)

    B = 256  # batch of latents: amortizes dispatch and fills the MXU M dim
    x = jax.random.normal(k_x, (B, IN_FEATURES), jnp.float32)
    params = init_params(k_p)
    packed = pack_params(params)

    out = jax.block_until_ready(gcn_decoder(x, packed))
    assert out.shape == (B, NR_POINTS, 2)

    # plain-JAX reference with the same bf16-operand / f32-accumulate math
    w1, b1, w2, b2, w3, b3 = params
    xb = x.astype(jnp.bfloat16)
    h = jnp.dot(xb, w1.astype(jnp.bfloat16), preferred_element_type=jnp.float32)
    h = jnp.maximum(h + b1, 0.0).astype(jnp.bfloat16)
    h = jnp.dot(h, w2.astype(jnp.bfloat16), preferred_element_type=jnp.float32)
    h = jnp.maximum(h + b2, 0.0).astype(jnp.bfloat16)
    y = jnp.dot(h, w3.astype(jnp.bfloat16), preferred_element_type=jnp.float32) + b3
    ref = y.reshape(B, NR_POINTS, 2)
    assert jnp.allclose(out, ref, atol=2e-2, rtol=2e-2)

    # single-latent path preserves the original module semantics: (F,) -> (nrPoints, 2)
    out1 = jax.block_until_ready(gcn_decoder(x[0], packed))
    assert out1.shape == (NR_POINTS, 2)
    assert jnp.allclose(out1, ref[0], atol=2e-2, rtol=2e-2)

    print("KERNEL_OK")
</pallas_src>

<mosaic_0001>
module attributes {stable_mosaic.version = 11 : i64} {
  func.func @_decoder_kernel(%arg0: i32, %arg1: memref<128x32xbf16, #tpu.memory_space<vmem>>, %arg2: memref<32x128xbf16, #tpu.memory_space<vmem>>, %arg3: memref<128x128xbf16, #tpu.memory_space<vmem>>, %arg4: memref<128x128xbf16, #tpu.memory_space<vmem>>, %arg5: memref<3x128xf32, #tpu.memory_space<vmem>>, %arg6: memref<128x128xf32, #tpu.memory_space<vmem>>) attributes {dimension_semantics = [#tpu.dimension_semantics<parallel>], iteration_bounds = array<i64: 2>, scalar_prefetch = 0 : i64, scratch_operands = 0 : i64, tpu.core_type = #tpu.core_type<tc>, window_params = [{transform_indices = @transform_0, window_bounds = array<i64: 128, 32>}, {pipeline_mode = #tpu.pipeline_mode<synchronous>, transform_indices = @transform_1, window_bounds = array<i64: 32, 128>}, {pipeline_mode = #tpu.pipeline_mode<synchronous>, transform_indices = @transform_2, window_bounds = array<i64: 128, 128>}, {pipeline_mode = #tpu.pipeline_mode<synchronous>, transform_indices = @transform_3, window_bounds = array<i64: 128, 128>}, {pipeline_mode = #tpu.pipeline_mode<synchronous>, transform_indices = @transform_4, window_bounds = array<i64: 3, 128>}, {transform_indices = @transform_5, window_bounds = array<i64: 128, 128>}]} {
    %c0 = arith.constant 0 : index
    %c0_0 = arith.constant 0 : index
    %0 = vector.load %arg1[%c0, %c0_0] : memref<128x32xbf16, #tpu.memory_space<vmem>>, vector<128x32xbf16>
    %c0_1 = arith.constant 0 : index
    %c0_2 = arith.constant 0 : index
    %1 = vector.load %arg2[%c0_1, %c0_2] : memref<32x128xbf16, #tpu.memory_space<vmem>>, vector<32x128xbf16>
    %cst = arith.constant dense<0.000000e+00> : vector<128x128xf32>
    %2 = tpu.matmul %0, %1, %cst {dimension_numbers = #tpu.dot_dimension_numbers<[1], [0], [0], [1], [0, 0, 1, 1], [], []>} : vector<128x32xbf16>, vector<32x128xbf16>, vector<128x128xf32> -> vector<128x128xf32>
    %c0_3 = arith.constant 0 : index
    %c0_4 = arith.constant 0 : index
    %3 = vector.load %arg5[%c0_3, %c0_4] : memref<3x128xf32, #tpu.memory_space<vmem>>, vector<1x128xf32>
    %4 = vector.broadcast %3 : vector<1x128xf32> to vector<128x128xf32>
    %5 = arith.addf %2, %4 : vector<128x128xf32>
    %cst_5 = arith.constant 0.000000e+00 : f32
    %6 = vector.broadcast %cst_5 : f32 to vector<128x128xf32>
    %7 = arith.maximumf %5, %6 : vector<128x128xf32>
    %8 = arith.truncf %7 : vector<128x128xf32> to vector<128x128xbf16>
    %c0_6 = arith.constant 0 : index
    %c0_7 = arith.constant 0 : index
    %9 = vector.load %arg3[%c0_6, %c0_7] : memref<128x128xbf16, #tpu.memory_space<vmem>>, vector<128x128xbf16>
    %cst_8 = arith.constant dense<0.000000e+00> : vector<128x128xf32>
    %10 = tpu.matmul %8, %9, %cst_8 {dimension_numbers = #tpu.dot_dimension_numbers<[1], [0], [0], [1], [0, 0, 1, 1], [], []>} : vector<128x128xbf16>, vector<128x128xbf16>, vector<128x128xf32> -> vector<128x128xf32>
    %c1 = arith.constant 1 : index
    %c0_9 = arith.constant 0 : index
    %11 = vector.load %arg5[%c1, %c0_9] : memref<3x128xf32, #tpu.memory_space<vmem>>, vector<1x128xf32>
    %12 = vector.broadcast %11 : vector<1x128xf32> to vector<128x128xf32>
    %13 = arith.addf %10, %12 : vector<128x128xf32>
    %cst_10 = arith.constant 0.000000e+00 : f32
    %14 = vector.broadcast %cst_10 : f32 to vector<128x128xf32>
    %15 = arith.maximumf %13, %14 : vector<128x128xf32>
    %16 = arith.truncf %15 : vector<128x128xf32> to vector<128x128xbf16>
    %c0_11 = arith.constant 0 : index
    %c0_12 = arith.constant 0 : index
    %17 = vector.load %arg4[%c0_11, %c0_12] : memref<128x128xbf16, #tpu.memory_space<vmem>>, vector<128x128xbf16>
    %cst_13 = arith.constant dense<0.000000e+00> : vector<128x128xf32>
    %18 = tpu.matmul %16, %17, %cst_13 {dimension_numbers = #tpu.dot_dimension_numbers<[1], [0], [0], [1], [0, 0, 1, 1], [], []>} : vector<128x128xbf16>, vector<128x128xbf16>, vector<128x128xf32> -> vector<128x128xf32>
    %c2 = arith.constant 2 : index
    %c0_14 = arith.constant 0 : index
    %19 = vector.load %arg5[%c2, %c0_14] : memref<3x128xf32, #tpu.memory_space<vmem>>, vector<1x128xf32>
    %20 = vector.broadcast %19 : vector<1x128xf32> to vector<128x128xf32>
    %21 = arith.addf %18, %20 : vector<128x128xf32>
    %c0_15 = arith.constant 0 : index
    %c0_16 = arith.constant 0 : index
    %22 = vector.load %arg6[%c0_15, %c0_16] : memref<128x128xf32, #tpu.memory_space<vmem>>, vector<128x128xf32>
    tpu.vector_store %arg6[%c0_15, %c0_16], %21 {strides = array<i32>} : memref<128x128xf32, #tpu.memory_space<vmem>>, vector<128x128xf32>,
    return
  }
  func.func @transform_0(%arg0: i32) -> (i32, i32) {
    %c0_i32 = arith.constant 0 : i32
    %c0_i32_0 = arith.constant 0 : i32
    return %arg0, %c0_i32 : i32, i32
  }
  func.func @transform_1(%arg0: i32) -> (i32, i32) {
    %c0_i32 = arith.constant 0 : i32
    %c0_i32_0 = arith.constant 0 : i32
    %c0_i32_1 = arith.constant 0 : i32
    return %c0_i32, %c0_i32_0 : i32, i32
  }
  func.func @transform_2(%arg0: i32) -> (i32, i32) {
    %c0_i32 = arith.constant 0 : i32
    %c0_i32_0 = arith.constant 0 : i32
    %c0_i32_1 = arith.constant 0 : i32
    return %c0_i32, %c0_i32_0 : i32, i32
  }
  func.func @transform_3(%arg0: i32) -> (i32, i32) {
    %c0_i32 = arith.constant 0 : i32
    %c0_i32_0 = arith.constant 0 : i32
    %c0_i32_1 = arith.constant 0 : i32
    return %c0_i32, %c0_i32_0 : i32, i32
  }
  func.func @transform_4(%arg0: i32) -> (i32, i32) {
    %c0_i32 = arith.constant 0 : i32
    %c0_i32_0 = arith.constant 0 : i32
    %c0_i32_1 = arith.constant 0 : i32
    return %c0_i32, %c0_i32_0 : i32, i32
  }
  func.func @transform_5(%arg0: i32) -> (i32, i32) {
    %c0_i32 = arith.constant 0 : i32
    %c0_i32_0 = arith.constant 0 : i32
    return %arg0, %c0_i32 : i32, i32
  }
}

</mosaic_0001>

<bundles_post_ra>
// kernel: gcn_decoder.1
= control target key start
LH: loop header
LB: loop body
LE: loop exit
PB: predicated region body
PF: predicated region fallthrough
CT: control target
= control target key end

     0   :  { %s1126_s18 = smov 0   ;;  %s1246_s0 = inlined_call_operand.vmem [shape: bf16[256,32], index: 0, kind: input, shape index: {}]   ;;  %s1247_s1 = inlined_call_operand.vmem [shape: bf16[32,128], index: 1, kind: input, shape index: {}]   ;;  %s1248_s2 = inlined_call_operand.vmem [shape: bf16[128,128], index: 2, kind: input, shape index: {}]   ;;  %s1249_s3 = inlined_call_operand.vmem [shape: bf16[128,128], index: 3, kind: input, shape index: {}]   ;;  %s1250_s4 = inlined_call_operand.vmem [shape: f32[3,128], index: 4, kind: input, shape index: {}]   ;;  %s1251_s5 = inlined_call_operand.vmem [shape: f32[256,128], index: 5, kind: output, shape index: {}]  }
   0x1 LB: > { %s880_s19 = sadd.s32 4294967295, %s1094_s18   ;;  %p884_p0 = scmp.ge.s32.totalorder %s1094_s18, 1  ;;  %s1094_s18 = sphi %s1126_s18, %s15_s18  }
   0x2   : > { %p188_p1 = scmp.lt.s32.totalorder %s1094_s18, 3 }
   0x4   : > { %p189_p2 = pnand %p884_p0, %p188_p1 }
   0x5   : > { %v1062_v0 = vld [vmem:[%s1247_s1] sm:$0xff] (!%p189_p2)   ;;  %s885_s22 = sshll.u32 (!%p189_p2), %s880_s19, 4  ;;  %v1063_v1 = vld [vmem:[%s1247_s1 + $0x8] sm:$0xff] (!%p189_p2)   ;;  %vm306_vm0 = vcmask (!%p189_p2), 261120   ;;  %v1074_v4 = vld [vmem:[%s1248_s2 + $0x10] sm:$0xff] (!%p189_p2)  }
   0x6   : > { %192 = sbr.rel (%p189_p2) target bundleno = 704 (0x2c0), region = 40  ;;  %p217_p3 = scmp.lt.s32.totalorder (!%p189_p2), %s885_s22, 31  ;;  %970 = vmatprep.subr.bf16.mxu0 (!%p189_p2), %v1062_v0  ;;  %v1072_v2 = vld [vmem:[%s1248_s2] sm:$0xff] (!%p189_p2)   ;;  %v1073_v3 = vld [vmem:[%s1248_s2 + $0x8] sm:$0xff] (!%p189_p2)   ;;  %v1075_v8 = vld [vmem:[%s1248_s2 + $0x18] sm:$0xff] (!%p189_p2)  }
   0x7   : > { %971 = vmatpush3.bf16.msra.mxu0 (!%p189_p2), %v1062_v0  ;;  %990 = vmatprep.subr.bf16.mxu1 (!%p189_p2), %v1072_v2  ;;  %v1076_v9 = vld [vmem:[%s1248_s2 + $0x20] sm:$0xff] (!%p189_p2)   ;;  %v1077_v12 = vld [vmem:[%s1248_s2 + $0x28] sm:$0xff] (!%p189_p2)   ;;  %v1078_v16 = vld [vmem:[%s1248_s2 + $0x30] sm:$0xff] (!%p189_p2)  }
   0x8   : > { %972 = vmatprep.subr.bf16.mxu0 (!%p189_p2), %v1063_v1  ;;  %991 = vmatpush3.bf16.msra.mxu1 (!%p189_p2), %v1072_v2  ;;  %v1079_v17 = vld [vmem:[%s1248_s2 + $0x38] sm:$0xff] (!%p189_p2)   ;;  %v1080_v18 = vld [vmem:[%s1249_s3] sm:$0xff] (!%p189_p2)   ;;  %v1081_v19 = vld [vmem:[%s1249_s3 + $0x8] sm:$0xff] (!%p189_p2)  }
   0x9   : > { %992 = vmatprep.subr.bf16.mxu1 (!%p189_p2), %v1073_v3  ;;  %v1082_v20 = vld [vmem:[%s1249_s3 + $0x10] sm:$0xff] (!%p189_p2)   ;;  %v1083_v21 = vld [vmem:[%s1249_s3 + $0x18] sm:$0xff] (!%p189_p2)   ;;  %v1084_v22 = vld [vmem:[%s1249_s3 + $0x20] sm:$0xff] (!%p189_p2)  }
   0xa   : > { %v1085_v23 = vld [vmem:[%s1249_s3 + $0x28] sm:$0xff] (!%p189_p2)   ;;  %v889_v24 = vld [vmem:[%s1250_s4] ss:$0 sm:$0xff] (!%p189_p2) }
   0xb   : > { %973 = vmatpush3.bf16.msra.mxu0 (!%p189_p2), %v1063_v1 }
   0xc   : > { %993 = vmatpush3.bf16.msra.mxu1 (!%p189_p2), %v1073_v3  ;;  %1022 = vmatprep.subr.bf16.mxu0 (!%p189_p2), %v1080_v18 }
   0xd   : > { %s1253_s22 = smov (!%p217_p3, %s885_s22), 31  ;;  %994 = vmatprep.subr.bf16.mxu1 %v1074_v4 }
   0xe   : > { %s886_s29 = sshll.u32 %s1253_s22, 2  ;;  %s888_s17 = sshll.u32 %s1253_s22, 3 }
   0xf   : > { %s1152_s7 = scalar_lea.vmem %s1246_s0, %s886_s29  ;;  %s1225_s24 = scalar_lea.vmem %s1251_s5, %s888_s17 }
  0x10   : > { %v1064_v5 = vld [vmem:[%s1152_s7] sm:$0xff]   ;;  %v1065_v6 = vld [vmem:[%s1152_s7 + $0x8] sm:$0xff]   ;;  %v1066_v7 = vld [vmem:[%s1152_s7 + $0x10] sm:$0xff]   ;;  %995 = vmatpush3.bf16.msra.mxu1 %v1074_v4 }
  0x11   : > { %974 = vmatprep.mubr.msk.bf16.mxu0 %vm306_vm0, %v1064_v5  ;;  %v1067_v10 = vld [vmem:[%s1152_s7 + $0x18] sm:$0xff]   ;;  %996 = vmatprep.subr.bf16.mxu1 %v1075_v8  ;;  %v1068_v11 = vld [vmem:[%s1152_s7 + $0x20] sm:$0xff]   ;;  %v1069_v13 = vld [vmem:[%s1152_s7 + $0x28] sm:$0xff]  }
  0x12   : > { %975 = vmatmul.mubr.msk.bf16.vlgmr.msra.gmra.mrb[0].mxu0 %vm306_vm0, %v1065_v6  ;;  %v1070_v14 = vld [vmem:[%s1152_s7 + $0x30] sm:$0xff]   ;;  %v1071_v15 = vld [vmem:[%s1152_s7 + $0x38] sm:$0xff]  }
  0x13   : > { %978 = vmatprep.mubr.msk.bf16.mxu0 %vm306_vm0, %v1066_v7  ;;  %1023 = vmatpush3.bf16.msra.mxu0 %v1080_v18  ;;  %v1087_v18 = vld [vmem:[%s1249_s3 + $0x38] sm:$0xff]  }
  0x14   : > { %997 = vmatpush3.bf16.msra.mxu1 %v1075_v8  ;;  %1024 = vmatprep.subr.bf16.mxu0 %v1081_v19 }
  0x15   : > { %998 = vmatprep.subr.bf16.mxu1 %v1076_v9 }
  0x17   : > { %1025 = vmatpush3.bf16.msra.mxu0 %v1081_v19  ;;  %v908_v19 = vld [vmem:[%s1250_s4 + $0x1] ss:$0 sm:$0xff] }
  0x18   : > { %999 = vmatpush3.bf16.msra.mxu1 %v1076_v9  ;;  %1026 = vmatprep.subr.bf16.mxu0 %v1082_v20 }
  0x19   : > { %1000 = vmatprep.subr.bf16.mxu1 %v1077_v12 }
  0x1a   : > { %979 = vmatmul.mubr.msk.bf16.gmra.mrb[4].mxu0 %vm306_vm0, %v1067_v10 }
  0x1b   : > { %982 = vmatprep.mubr.msk.bf16.mxu0 %vm306_vm0, %v1068_v11  ;;  %1027 = vmatpush3.bf16.msra.mxu0 %v1082_v20 }
  0x1c   : > { %1001 = vmatpush3.bf16.msra.mxu1 %v1077_v12  ;;  %1028 = vmatprep.subr.bf16.mxu0 %v1083_v21 }
  0x1d   : > { %1002 = vmatprep.subr.bf16.mxu1 %v1078_v16 }
  0x1f   : > { %1029 = vmatpush3.bf16.msra.mxu0 %v1083_v21 }
  0x20   : > { %1003 = vmatpush3.bf16.msra.mxu1 %v1078_v16  ;;  %1030 = vmatprep.subr.bf16.mxu0 %v1084_v22 }
  0x21   : > { %1004 = vmatprep.subr.bf16.mxu1 %v1079_v17 }
  0x22   : > { %983 = vmatmul.mubr.msk.bf16.gmra.mrb[8].mxu0 %vm306_vm0, %v1069_v13 }
  0x23   : > { %986 = vmatprep.mubr.msk.bf16.mxu0 %vm306_vm0, %v1070_v14  ;;  %1031 = vmatpush3.bf16.msra.mxu0 %v1084_v22 }
  0x24   : > { %1005 = vmatpush3.bf16.msra.mxu1 %v1079_v17  ;;  %1032 = vmatprep.subr.bf16.mxu0 %v1085_v23  ;;  %v1086_v17 = vld [vmem:[%s1249_s3 + $0x30] sm:$0xff]  }
  0x27   : > { %1033 = vmatpush3.bf16.msra.mxu0 %v1085_v23 }
  0x28   : > { %1034 = vmatprep.subr.bf16.mxu0 %v1086_v17 }
  0x2a   : > { %987 = vmatmul.mubr.msk.bf16.gmra.mrb[12].mxu0 %vm306_vm0, %v1071_v15 }
  0x2b   : > { %1035 = vmatpush3.bf16.msra.mxu0 %v1086_v17 }
  0x2c   : > { %1036 = vmatprep.subr.bf16.mxu0 %v1087_v18 }
  0x2f   : > { %1037 = vmatpush3.bf16.msra.mxu0 %v1087_v18 }
  0xe5   : > { %v976_v25 = vpop.f32.mrb[0].mxu0 }
  0xe6   : > { %v374_v26 = vadd.f32 %v976_v25, %v889_v24  ;;  %v365_v27 = vpop.f32.mrb[1].mxu0 }
  0xe7   : > { %v366_v28 = vadd.f32 %v889_v24, %v365_v27  ;;  %v977_v29 = vpop.f32.mrb[2].mxu0 }
  0xe8   : > { %v377_v30 = vadd.f32 %v977_v29, %v889_v24  ;;  %v368_v31 = vpop.f32.mrb[3].mxu0  ;;  %v430_v33 = vmax.f32 %v374_v26, 0.0 }
  0xe9   : > { %v369_v32 = vadd.f32 %v889_v24, %v368_v31  ;;  %v428_v35 = vmax.f32 %v366_v28, 0.0 }
  0xea   : > { %v431_v34 = vmax.f32 %v377_v30, 0.0 }
  0xeb   : > { %v429_v36 = vmax.f32 %v369_v32, 0.0 }
  0xec   : > { %v445_v37 = vpack.c.bf16 %v431_v34, %v430_v33 }
  0xed   : > { %v980_v38 = vpop.f32.mrb[4].mxu0  ;;  %v444_v39 = vpack.c.bf16 %v429_v36, %v428_v35 }
  0xee   : > { %v390_v40 = vadd.f32 %v980_v38, %v889_v24  ;;  %v381_v41 = vpop.f32.mrb[5].mxu0 }
  0xef   : > { %v382_v42 = vadd.f32 %v889_v24, %v381_v41  ;;  %v981_v43 = vpop.f32.mrb[6].mxu0  ;;  %1006 = vmatprep.mubr.bf16.mxu1 %v444_v39 }
  0xf0   : > { %v393_v44 = vadd.f32 %v981_v43, %v889_v24  ;;  %v384_v45 = vpop.f32.mrb[7].mxu0  ;;  %1007 = vmatmul.mubr.bf16.vlgmr.msra.gmra.mrb[0].mxu1 %v445_v37  ;;  %v434_v47 = vmax.f32 %v390_v40, 0.0 }
  0xf1   : > { %v385_v46 = vadd.f32 %v889_v24, %v384_v45  ;;  %v432_v49 = vmax.f32 %v382_v42, 0.0 }
  0xf2   : > { %v435_v48 = vmax.f32 %v393_v44, 0.0 }
  0xf3   : > { %v433_v50 = vmax.f32 %v385_v46, 0.0 }
  0xf4   : > { %v447_v51 = vpack.c.bf16 %v435_v48, %v434_v47 }
  0xf5   : > { %v446_v52 = vpack.c.bf16 %v433_v50, %v432_v49  ;;  %v984_v53 = vpop.f32.mrb[8].mxu0 }
  0xf6   : > { %v406_v54 = vadd.f32 %v984_v53, %v889_v24  ;;  %v397_v55 = vpop.f32.mrb[9].mxu0 }
  0xf7   : > { %v398_v56 = vadd.f32 %v889_v24, %v397_v55  ;;  %v985_v57 = vpop.f32.mrb[10].mxu0  ;;  %1010 = vmatprep.mubr.bf16.mxu1 %v446_v52 }
  0xf8   : > { %v409_v58 = vadd.f32 %v985_v57, %v889_v24  ;;  %v400_v59 = vpop.f32.mrb[11].mxu0  ;;  %1011 = vmatmul.mubr.bf16.gmra.mrb[4].mxu1 %v447_v51  ;;  %v438_v61 = vmax.f32 %v406_v54, 0.0 }
  0xf9   : > { %v401_v60 = vadd.f32 %v889_v24, %v400_v59  ;;  %v436_v63 = vmax.f32 %v398_v56, 0.0 }
  0xfa   : > { %v439_v62 = vmax.f32 %v409_v58, 0.0 }
  0xfb   : > { %v437_v0 = vmax.f32 %v401_v60, 0.0 }
  0xfc   : > { %v449_v1 = vpack.c.bf16 %v439_v62, %v438_v61 }
  0xfd   : > { %v448_v2 = vpack.c.bf16 %v437_v0, %v436_v63  ;;  %v988_v3 = vpop.f32.mrb[12].mxu0 }
  0xfe   : > { %v422_v4 = vadd.f32 %v988_v3, %v889_v24  ;;  %v413_v5 = vpop.f32.mrb[13].mxu0 }
  0xff   : > { %v414_v6 = vadd.f32 %v889_v24, %v413_v5  ;;  %v989_v7 = vpop.f32.mrb[14].mxu0  ;;  %1014 = vmatprep.mubr.bf16.mxu1 %v448_v2 }
 0x100   : > { %v425_v8 = vadd.f32 %v989_v7, %v889_v24  ;;  %v416_v9 = vpop.f32.mrb[15].mxu0  ;;  %1015 = vmatmul.mubr.bf16.gmra.mrb[8].mxu1 %v449_v1  ;;  %v442_v11 = vmax.f32 %v422_v4, 0.0 }
 0x101   : > { %v417_v10 = vadd.f32 %v889_v24, %v416_v9  ;;  %v440_v13 = vmax.f32 %v414_v6, 0.0 }
 0x102   : > { %v443_v12 = vmax.f32 %v425_v8, 0.0 }
 0x103   : > { %v441_v14 = vmax.f32 %v417_v10, 0.0 }
 0x104   : > { %v451_v15 = vpack.c.bf16 %v443_v12, %v442_v11  ;;  %v917_v12 = vld [vmem:[%s1250_s4 + $0x2] ss:$0 sm:$0xff] }
 0x105   : > { %v450_v16 = vpack.c.bf16 %v441_v14, %v440_v13 }
 0x107   : > { %1018 = vmatprep.mubr.bf16.mxu1 %v450_v16 }
 0x108   : > { %1019 = vmatmul.mubr.bf16.gmra.mrb[12].mxu1 %v451_v15 }
 0x1c3   : > { %v1008_v20 = vpop.f32.mrb[0].mxu1 }
 0x1c4   : > { %v564_v21 = vadd.f32 %v1008_v20, %v908_v19  ;;  %v555_v22 = vpop.f32.mrb[1].mxu1 }
 0x1c5   : > { %v556_v23 = vadd.f32 %v908_v19, %v555_v22  ;;  %v1009_v24 = vpop.f32.mrb[2].mxu1 }
 0x1c6   : > { %v567_v25 = vadd.f32 %v1009_v24, %v908_v19  ;;  %v558_v26 = vpop.f32.mrb[3].mxu1  ;;  %v620_v28 = vmax.f32 %v564_v21, 0.0 }
 0x1c7   : > { %v559_v27 = vadd.f32 %v908_v19, %v558_v26  ;;  %v618_v30 = vmax.f32 %v556_v23, 0.0 }
 0x1c8   : > { %v621_v29 = vmax.f32 %v567_v25, 0.0 }
 0x1c9   : > { %v619_v31 = vmax.f32 %v559_v27, 0.0 }
 0x1ca   : > { %v635_v32 = vpack.c.bf16 %v621_v29, %v620_v28 }
 0x1cb   : > { %v634_v33 = vpack.c.bf16 %v619_v31, %v618_v30  ;;  %v1012_v34 = vpop.f32.mrb[4].mxu1 }
 0x1cc   : > { %v580_v35 = vadd.f32 %v1012_v34, %v908_v19  ;;  %v571_v36 = vpop.f32.mrb[5].mxu1 }
 0x1cd   : > { %v572_v37 = vadd.f32 %v908_v19, %v571_v36  ;;  %v1013_v38 = vpop.f32.mrb[6].mxu1  ;;  %1038 = vmatprep.mubr.bf16.mxu0 %v634_v33 }
 0x1ce   : > { %v583_v39 = vadd.f32 %v1013_v38, %v908_v19  ;;  %v574_v40 = vpop.f32.mrb[7].mxu1  ;;  %1039 = vmatmul.mubr.bf16.vlgmr.msra.gmra.mrb[16].mxu0 %v635_v32  ;;  %v624_v42 = vmax.f32 %v580_v35, 0.0 }
 0x1cf   : > { %v575_v41 = vadd.f32 %v908_v19, %v574_v40  ;;  %v622_v44 = vmax.f32 %v572_v37, 0.0 }
 0x1d0   : > { %v625_v43 = vmax.f32 %v583_v39, 0.0 }
 0x1d1   : > { %v623_v45 = vmax.f32 %v575_v41, 0.0 }
 0x1d2   : > { %v637_v46 = vpack.c.bf16 %v625_v43, %v624_v42 }
 0x1d3   : > { %v636_v47 = vpack.c.bf16 %v623_v45, %v622_v44  ;;  %v1016_v48 = vpop.f32.mrb[8].mxu1 }
 0x1d4   : > { %v596_v49 = vadd.f32 %v1016_v48, %v908_v19  ;;  %v587_v50 = vpop.f32.mrb[9].mxu1 }
 0x1d5   : > { %v588_v51 = vadd.f32 %v908_v19, %v587_v50  ;;  %v1017_v52 = vpop.f32.mrb[10].mxu1  ;;  %1042 = vmatprep.mubr.bf16.mxu0 %v636_v47 }
 0x1d6   : > { %v599_v53 = vadd.f32 %v1017_v52, %v908_v19  ;;  %v590_v54 = vpop.f32.mrb[11].mxu1  ;;  %1043 = vmatmul.mubr.bf16.gmra.mrb[20].mxu0 %v637_v46  ;;  %v628_v56 = vmax.f32 %v596_v49, 0.0 }
 0x1d7   : > { %v591_v55 = vadd.f32 %v908_v19, %v590_v54  ;;  %v626_v58 = vmax.f32 %v588_v51, 0.0 }
 0x1d8   : > { %v629_v57 = vmax.f32 %v599_v53, 0.0 }
 0x1d9   : > { %v627_v59 = vmax.f32 %v591_v55, 0.0 }
 0x1da   : > { %v639_v60 = vpack.c.bf16 %v629_v57, %v628_v56 }
 0x1db   : > { %v638_v61 = vpack.c.bf16 %v627_v59, %v626_v58  ;;  %v1020_v62 = vpop.f32.mrb[12].mxu1 }
 0x1dc   : > { %v612_v63 = vadd.f32 %v1020_v62, %v908_v19  ;;  %v603_v0 = vpop.f32.mrb[13].mxu1 }
 0x1dd   : > { %v604_v1 = vadd.f32 %v908_v19, %v603_v0  ;;  %v1021_v2 = vpop.f32.mrb[14].mxu1  ;;  %1046 = vmatprep.mubr.bf16.mxu0 %v638_v61 }
 0x1de   : > { %v615_v3 = vadd.f32 %v1021_v2, %v908_v19  ;;  %v606_v4 = vpop.f32.mrb[15].mxu1  ;;  %1047 = vmatmul.mubr.bf16.gmra.mrb[24].mxu0 %v639_v60  ;;  %v632_v6 = vmax.f32 %v612_v63, 0.0 }
 0x1df   : > { %v607_v5 = vadd.f32 %v908_v19, %v606_v4  ;;  %v630_v8 = vmax.f32 %v604_v1, 0.0 }
 0x1e0   : > { %v633_v7 = vmax.f32 %v615_v3, 0.0 }
 0x1e1   : > { %v631_v9 = vmax.f32 %v607_v5, 0.0 }
 0x1e2   : > { %v641_v10 = vpack.c.bf16 %v633_v7, %v632_v6 }
 0x1e3   : > { %v640_v11 = vpack.c.bf16 %v631_v9, %v630_v8 }
 0x1e5   : > { %1050 = vmatprep.mubr.bf16.mxu0 %v640_v11 }
 0x1e6   : > { %1051 = vmatmul.mubr.bf16.gmra.mrb[28].mxu0 %v641_v10 }
 0x2a1   : > { %v1040_v13 = vpop.f32.mrb[16].mxu0 }
 0x2a2   : > { %v754_v14 = vadd.f32 %v1040_v13, %v917_v12  ;;  %v745_v15 = vpop.f32.mrb[17].mxu0 }
 0x2a3   : > { %v746_v16 = vadd.f32 %v917_v12, %v745_v15  ;;  %v1041_v17 = vpop.f32.mrb[18].mxu0 }
 0x2a4   : > { %810 = vst [vmem:[%s1225_s24 + $0x10] sm:$0xff] %v754_v14  ;;  %v757_v18 = vadd.f32 %v1041_v17, %v917_v12  ;;  %v748_v19 = vpop.f32.mrb[19].mxu0 }
 0x2a5   : > { %808 = vst [vmem:[%s1225_s24] sm:$0xff] %v746_v16  ;;  %v749_v20 = vadd.f32 %v917_v12, %v748_v19 }
 0x2a6   : > { %811 = vst [vmem:[%s1225_s24 + $0x18] sm:$0xff] %v757_v18 }
 0x2a7   : > { %809 = vst [vmem:[%s1225_s24 + $0x8] sm:$0xff] %v749_v20 }
 0x2a9   : > { %v1044_v21 = vpop.f32.mrb[20].mxu0 }
 0x2aa   : > { %v770_v22 = vadd.f32 %v1044_v21, %v917_v12  ;;  %v761_v23 = vpop.f32.mrb[21].mxu0 }
 0x2ab   : > { %v762_v24 = vadd.f32 %v917_v12, %v761_v23  ;;  %v1045_v25 = vpop.f32.mrb[22].mxu0 }
 0x2ac   : > { %814 = vst [vmem:[%s1225_s24 + $0x30] sm:$0xff] %v770_v22  ;;  %v773_v26 = vadd.f32 %v1045_v25, %v917_v12  ;;  %v764_v27 = vpop.f32.mrb[23].mxu0 }
 0x2ad   : > { %812 = vst [vmem:[%s1225_s24 + $0x20] sm:$0xff] %v762_v24  ;;  %v765_v28 = vadd.f32 %v917_v12, %v764_v27 }
 0x2ae   : > { %815 = vst [vmem:[%s1225_s24 + $0x38] sm:$0xff] %v773_v26 }
 0x2af   : > { %813 = vst [vmem:[%s1225_s24 + $0x28] sm:$0xff] %v765_v28 }
 0x2b1   : > { %v1048_v29 = vpop.f32.mrb[24].mxu0 }
 0x2b2   : > { %v786_v30 = vadd.f32 %v1048_v29, %v917_v12  ;;  %v777_v31 = vpop.f32.mrb[25].mxu0 }
 0x2b3   : > { %v778_v32 = vadd.f32 %v917_v12, %v777_v31  ;;  %v1049_v33 = vpop.f32.mrb[26].mxu0 }
 0x2b4   : > { %818 = vst [vmem:[%s1225_s24 + $0x50] sm:$0xff] %v786_v30  ;;  %v789_v34 = vadd.f32 %v1049_v33, %v917_v12  ;;  %v780_v35 = vpop.f32.mrb[27].mxu0 }
 0x2b5   : > { %816 = vst [vmem:[%s1225_s24 + $0x40] sm:$0xff] %v778_v32  ;;  %v781_v36 = vadd.f32 %v917_v12, %v780_v35 }
 0x2b6   : > { %819 = vst [vmem:[%s1225_s24 + $0x58] sm:$0xff] %v789_v34 }
 0x2b7   : > { %817 = vst [vmem:[%s1225_s24 + $0x48] sm:$0xff] %v781_v36 }
 0x2b9   : > { %v1052_v37 = vpop.f32.mrb[28].mxu0 }
 0x2ba   : > { %v802_v38 = vadd.f32 %v1052_v37, %v917_v12  ;;  %v793_v39 = vpop.f32.mrb[29].mxu0 }
 0x2bb   : > { %v794_v40 = vadd.f32 %v917_v12, %v793_v39  ;;  %v1053_v41 = vpop.f32.mrb[30].mxu0 }
 0x2bc   : > { %822 = vst [vmem:[%s1225_s24 + $0x70] sm:$0xff] %v802_v38  ;;  %v805_v42 = vadd.f32 %v1053_v41, %v917_v12  ;;  %v796_v43 = vpop.f32.mrb[31].mxu0 }
 0x2bd   : > { %820 = vst [vmem:[%s1225_s24 + $0x60] sm:$0xff] %v794_v40  ;;  %v797_v44 = vadd.f32 %v917_v12, %v796_v43 }
 0x2be   : > { %823 = vst [vmem:[%s1225_s24 + $0x78] sm:$0xff] %v805_v42 }
 0x2bf   : > { %821 = vst [vmem:[%s1225_s24 + $0x68] sm:$0xff] %v797_v44 }
 0x2c0 PF: > { %s15_s18 = sadd.s32 1, %s1094_s18  }
 0x2c1   : > { %p12_p4 = scmp.ge.s32.totalorder %s15_s18, 4  }
 0x2c3   :  { %14 = sbr.rel (!%p12_p4) target bundleno = 1 (0x1), region = 70 }

</bundles_post_ra>
